<compile_context>
chip_gen: v7x
topology: tpu7x:2x2x1
jax: 0.10.0
libtpu: 0.0.40
codegen_flags: <defaults>
</compile_context>

<pallas_src>
import functools

import jax
import jax.numpy as jnp
from jax.experimental import pallas as pl
from jax.experimental.pallas import tpu as pltpu


def _round_up(x: int, m: int) -> int:
    return ((x + m - 1) // m) * m


def _pad2d(a, rows: int, cols: int):
    r, c = a.shape
    return jnp.pad(a, ((0, rows - r), (0, cols - c)))


# ----------------------------------------------------------------------------
# Fused MLP kernel: one grid step processes a (TM, K0) row-tile of the input
# through ALL layers; weights/biases stay resident in VMEM across the grid.
# ----------------------------------------------------------------------------
def _mlp_fused_kernel(x_ref, *refs, acts):
    o_ref = refs[-1]
    wb_refs = refs[:-1]          # w0, b0, w1, b1, ...

    h = x_ref[...]               # (TM, K0_pad) f32
    for i, act in enumerate(acts):
        w = wb_refs[2 * i][...]              # (K_pad, N_pad)
        b = wb_refs[2 * i + 1][0:1, :]       # (1, N_pad) row of replicated tile
        h = jnp.dot(h, w, preferred_element_type=jnp.float32) + b
        if act == "tanh":
            h = jnp.tanh(h)
        elif act == "sigmoid":
            h = jax.nn.sigmoid(h)
        elif act == "relu":
            h = jnp.maximum(h, 0.0)
        elif act == "none":
            pass                              # Identical()
        else:
            raise TypeError(f"activation type {act} is out of range")
    o_ref[...] = h.astype(o_ref.dtype)


def mlp_fused(x_pad, weights_pad, biases_pad, acts, tm):
    """Run the whole padded MLP in a single pallas_call.

    x_pad:       (B_pad, K0_pad) f32, B_pad % tm == 0, dims 8/128-aligned
    weights_pad: list of (K_pad_i, N_pad_i) f32
    biases_pad:  list of (8, N_pad_i) f32 (rows replicated)
    """
    B_pad, K0 = x_pad.shape
    N_last = weights_pad[-1].shape[1]
    grid = (B_pad // tm,)

    in_specs = [pl.BlockSpec((tm, K0), lambda i: (i, 0))]
    flat_args = []
    for w, b in zip(weights_pad, biases_pad):
        in_specs.append(pl.BlockSpec(w.shape, lambda i: (0, 0)))
        in_specs.append(pl.BlockSpec(b.shape, lambda i: (0, 0)))
        flat_args.extend([w, b])

    return pl.pallas_call(
        functools.partial(_mlp_fused_kernel, acts=tuple(acts)),
        out_shape=jax.ShapeDtypeStruct((B_pad, N_last), jnp.float32),
        grid=grid,
        in_specs=in_specs,
        out_specs=pl.BlockSpec((tm, N_last), lambda i: (i, 0)),
        compiler_params=pltpu.CompilerParams(
            dimension_semantics=("parallel",),
        ),
    )(x_pad, *flat_args)


# ----------------------------------------------------------------------------
# Net equivalent
# ----------------------------------------------------------------------------
class NetPallas:
    def __init__(self, layer_unit_count_list, active_func_list, batch_size, key):
        assert len(active_func_list) == len(layer_unit_count_list) - 1
        for a in active_func_list:
            if a not in ("tanh", "sigmoid", "relu", "none"):
                raise TypeError(f"activation type {a} is out of range")
        self.batch_size = batch_size
        self.acts = list(active_func_list)
        self.units = list(layer_unit_count_list)
        # Lane dims padded to 128 (sublane dim of each weight is the previous
        # layer's padded lane dim, so it is automatically 8-aligned too).
        self.units_pad = [_round_up(u, 128) for u in self.units]

        self.params = []         # unpadded (w, b), PyTorch Linear semantics
        self.params_pad = []     # padded, kernel-resident layout
        for i in range(len(self.units) - 1):
            fan_in, fan_out = self.units[i], self.units[i + 1]
            key, kw, kb = jax.random.split(key, 3)
            bound = 1.0 / (fan_in ** 0.5)
            # PyTorch Linear-style uniform init; stored as (in, out) so the
            # kernel computes y = x @ W + b (== x @ weight.T + bias in torch).
            w = jax.random.uniform(kw, (fan_in, fan_out), jnp.float32,
                                   minval=-bound, maxval=bound)
            b = jax.random.uniform(kb, (fan_out,), jnp.float32,
                                   minval=-bound, maxval=bound)
            self.params.append((w, b))

            kp, np_ = self.units_pad[i], self.units_pad[i + 1]
            w_pad = _pad2d(w, kp, np_)
            # Bias replicated to an (8, N_pad) tile once, at init.
            b_pad = jnp.tile(jnp.pad(b, (0, np_ - fan_out)).reshape(1, np_),
                             (8, 1))
            self.params_pad.append((w_pad, b_pad))

        # Batch tiling: pad B to a multiple of 8, cap row-tile at 256.
        b8 = _round_up(max(batch_size, 1), 8)
        self.tm = min(b8, 256)
        self.b_pad = _round_up(b8, self.tm)

    def __call__(self, x):
        # x.view(batch_size, -1)
        x_flat = x.reshape(self.batch_size, -1).astype(jnp.float32)
        assert x_flat.shape[1] == self.units[0]
        x_pad = _pad2d(x_flat, self.b_pad, self.units_pad[0])
        ws = [w for (w, _) in self.params_pad]
        bs = [b for (_, b) in self.params_pad]
        out_pad = mlp_fused(x_pad, ws, bs, self.acts, self.tm)
        return out_pad[: self.batch_size, : self.units[-1]]

    def reference(self, x):
        """Plain-JAX reference for verification (unpadded weights)."""
        y = x.reshape(self.batch_size, -1).astype(jnp.float32)
        for (w, b), act in zip(self.params, self.acts):
            y = y @ w + b
            if act == "tanh":
                y = jnp.tanh(y)
            elif act == "sigmoid":
                y = jax.nn.sigmoid(y)
            elif act == "relu":
                y = jnp.maximum(y, 0.0)
        return y


if __name__ == "__main__":
    key = jax.random.PRNGKey(0)
    key, kx, kp = jax.random.split(key, 3)

    batch_size = 2
    # (B, C, H, W) = (2, 1, 4, 4) -> flattens to 16 features
    x = jax.random.normal(kx, (batch_size, 1, 4, 4), jnp.float32)

    layer_unit_count_list = [16, 32, 32, 32, 8]
    active_func_list = ["tanh", "relu", "sigmoid", "none"]

    net = NetPallas(layer_unit_count_list, active_func_list, batch_size, kp)

    out = net(x)
    out = jax.block_until_ready(out)

    ref = net.reference(x)
    assert out.shape == (batch_size, layer_unit_count_list[-1])
    assert jnp.allclose(out, ref, atol=1e-5, rtol=1e-5), "mismatch vs reference"

    print("KERNEL_OK")
</pallas_src>

<mosaic_0001>
module attributes {stable_mosaic.version = 11 : i64} {
  func.func @_mlp_fused_kernel(%arg0: i32, %arg1: memref<8x128xf32, #tpu.memory_space<vmem>>, %arg2: memref<128x128xf32, #tpu.memory_space<vmem>>, %arg3: memref<8x128xf32, #tpu.memory_space<vmem>>, %arg4: memref<128x128xf32, #tpu.memory_space<vmem>>, %arg5: memref<8x128xf32, #tpu.memory_space<vmem>>, %arg6: memref<128x128xf32, #tpu.memory_space<vmem>>, %arg7: memref<8x128xf32, #tpu.memory_space<vmem>>, %arg8: memref<128x128xf32, #tpu.memory_space<vmem>>, %arg9: memref<8x128xf32, #tpu.memory_space<vmem>>, %arg10: memref<8x128xf32, #tpu.memory_space<vmem>>) attributes {dimension_semantics = [#tpu.dimension_semantics<parallel>], iteration_bounds = array<i64: 1>, scalar_prefetch = 0 : i64, scratch_operands = 0 : i64, tpu.core_type = #tpu.core_type<tc>, window_params = [{transform_indices = @transform_0, window_bounds = array<i64: 8, 128>}, {pipeline_mode = #tpu.pipeline_mode<synchronous>, transform_indices = @transform_1, window_bounds = array<i64: 128, 128>}, {pipeline_mode = #tpu.pipeline_mode<synchronous>, transform_indices = @transform_2, window_bounds = array<i64: 8, 128>}, {pipeline_mode = #tpu.pipeline_mode<synchronous>, transform_indices = @transform_3, window_bounds = array<i64: 128, 128>}, {pipeline_mode = #tpu.pipeline_mode<synchronous>, transform_indices = @transform_4, window_bounds = array<i64: 8, 128>}, {pipeline_mode = #tpu.pipeline_mode<synchronous>, transform_indices = @transform_5, window_bounds = array<i64: 128, 128>}, {pipeline_mode = #tpu.pipeline_mode<synchronous>, transform_indices = @transform_6, window_bounds = array<i64: 8, 128>}, {pipeline_mode = #tpu.pipeline_mode<synchronous>, transform_indices = @transform_7, window_bounds = array<i64: 128, 128>}, {pipeline_mode = #tpu.pipeline_mode<synchronous>, transform_indices = @transform_8, window_bounds = array<i64: 8, 128>}, {transform_indices = @transform_9, window_bounds = array<i64: 8, 128>}]} {
    %c0 = arith.constant 0 : index
    %c0_0 = arith.constant 0 : index
    %0 = vector.load %arg1[%c0, %c0_0] : memref<8x128xf32, #tpu.memory_space<vmem>>, vector<8x128xf32>
    %c0_1 = arith.constant 0 : index
    %c0_2 = arith.constant 0 : index
    %1 = vector.load %arg2[%c0_1, %c0_2] : memref<128x128xf32, #tpu.memory_space<vmem>>, vector<128x128xf32>
    %c0_3 = arith.constant 0 : index
    %c0_4 = arith.constant 0 : index
    %2 = vector.load %arg3[%c0_3, %c0_4] : memref<8x128xf32, #tpu.memory_space<vmem>>, vector<1x128xf32>
    %cst = arith.constant dense<0.000000e+00> : vector<8x128xf32>
    %3 = tpu.matmul %0, %1, %cst {dimension_numbers = #tpu.dot_dimension_numbers<[1], [0], [0], [1], [0, 0, 1, 1], [], []>} : vector<8x128xf32>, vector<128x128xf32>, vector<8x128xf32> -> vector<8x128xf32>
    %4 = vector.broadcast %2 : vector<1x128xf32> to vector<8x128xf32>
    %5 = arith.addf %3, %4 : vector<8x128xf32>
    %6 = math.tanh %5 : vector<8x128xf32>
    %c0_5 = arith.constant 0 : index
    %c0_6 = arith.constant 0 : index
    %7 = vector.load %arg4[%c0_5, %c0_6] : memref<128x128xf32, #tpu.memory_space<vmem>>, vector<128x128xf32>
    %c0_7 = arith.constant 0 : index
    %c0_8 = arith.constant 0 : index
    %8 = vector.load %arg5[%c0_7, %c0_8] : memref<8x128xf32, #tpu.memory_space<vmem>>, vector<1x128xf32>
    %cst_9 = arith.constant dense<0.000000e+00> : vector<8x128xf32>
    %9 = tpu.matmul %6, %7, %cst_9 {dimension_numbers = #tpu.dot_dimension_numbers<[1], [0], [0], [1], [0, 0, 1, 1], [], []>} : vector<8x128xf32>, vector<128x128xf32>, vector<8x128xf32> -> vector<8x128xf32>
    %10 = vector.broadcast %8 : vector<1x128xf32> to vector<8x128xf32>
    %11 = arith.addf %9, %10 : vector<8x128xf32>
    %cst_10 = arith.constant 0.000000e+00 : f32
    %12 = vector.broadcast %cst_10 : f32 to vector<8x128xf32>
    %13 = arith.maximumf %11, %12 : vector<8x128xf32>
    %c0_11 = arith.constant 0 : index
    %c0_12 = arith.constant 0 : index
    %14 = vector.load %arg6[%c0_11, %c0_12] : memref<128x128xf32, #tpu.memory_space<vmem>>, vector<128x128xf32>
    %c0_13 = arith.constant 0 : index
    %c0_14 = arith.constant 0 : index
    %15 = vector.load %arg7[%c0_13, %c0_14] : memref<8x128xf32, #tpu.memory_space<vmem>>, vector<1x128xf32>
    %cst_15 = arith.constant dense<0.000000e+00> : vector<8x128xf32>
    %16 = tpu.matmul %13, %14, %cst_15 {dimension_numbers = #tpu.dot_dimension_numbers<[1], [0], [0], [1], [0, 0, 1, 1], [], []>} : vector<8x128xf32>, vector<128x128xf32>, vector<8x128xf32> -> vector<8x128xf32>
    %17 = vector.broadcast %15 : vector<1x128xf32> to vector<8x128xf32>
    %18 = arith.addf %16, %17 : vector<8x128xf32>
    %19 = arith.negf %18 : vector<8x128xf32>
    %20 = math.exp %19 : vector<8x128xf32>
    %cst_16 = arith.constant 1.000000e+00 : f32
    %21 = vector.broadcast %cst_16 : f32 to vector<8x128xf32>
    %22 = arith.addf %21, %20 : vector<8x128xf32>
    %23 = arith.divf %21, %22 : vector<8x128xf32>
    %c0_17 = arith.constant 0 : index
    %c0_18 = arith.constant 0 : index
    %24 = vector.load %arg8[%c0_17, %c0_18] : memref<128x128xf32, #tpu.memory_space<vmem>>, vector<128x128xf32>
    %c0_19 = arith.constant 0 : index
    %c0_20 = arith.constant 0 : index
    %25 = vector.load %arg9[%c0_19, %c0_20] : memref<8x128xf32, #tpu.memory_space<vmem>>, vector<1x128xf32>
    %cst_21 = arith.constant dense<0.000000e+00> : vector<8x128xf32>
    %26 = tpu.matmul %23, %24, %cst_21 {dimension_numbers = #tpu.dot_dimension_numbers<[1], [0], [0], [1], [0, 0, 1, 1], [], []>} : vector<8x128xf32>, vector<128x128xf32>, vector<8x128xf32> -> vector<8x128xf32>
    %27 = vector.broadcast %25 : vector<1x128xf32> to vector<8x128xf32>
    %28 = arith.addf %26, %27 : vector<8x128xf32>
    %c0_22 = arith.constant 0 : index
    %c0_23 = arith.constant 0 : index
    %29 = vector.load %arg10[%c0_22, %c0_23] : memref<8x128xf32, #tpu.memory_space<vmem>>, vector<8x128xf32>
    tpu.vector_store %arg10[%c0_22, %c0_23], %28 {strides = array<i32>} : memref<8x128xf32, #tpu.memory_space<vmem>>, vector<8x128xf32>,
    return
  }
  func.func @transform_0(%arg0: i32) -> (i32, i32) {
    %c0_i32 = arith.constant 0 : i32
    %c0_i32_0 = arith.constant 0 : i32
    return %arg0, %c0_i32 : i32, i32
  }
  func.func @transform_1(%arg0: i32) -> (i32, i32) {
    %c0_i32 = arith.constant 0 : i32
    %c0_i32_0 = arith.constant 0 : i32
    %c0_i32_1 = arith.constant 0 : i32
    return %c0_i32, %c0_i32_0 : i32, i32
  }
  func.func @transform_2(%arg0: i32) -> (i32, i32) {
    %c0_i32 = arith.constant 0 : i32
    %c0_i32_0 = arith.constant 0 : i32
    %c0_i32_1 = arith.constant 0 : i32
    return %c0_i32, %c0_i32_0 : i32, i32
  }
  func.func @transform_3(%arg0: i32) -> (i32, i32) {
    %c0_i32 = arith.constant 0 : i32
    %c0_i32_0 = arith.constant 0 : i32
    %c0_i32_1 = arith.constant 0 : i32
    return %c0_i32, %c0_i32_0 : i32, i32
  }
  func.func @transform_4(%arg0: i32) -> (i32, i32) {
    %c0_i32 = arith.constant 0 : i32
    %c0_i32_0 = arith.constant 0 : i32
    %c0_i32_1 = arith.constant 0 : i32
    return %c0_i32, %c0_i32_0 : i32, i32
  }
  func.func @transform_5(%arg0: i32) -> (i32, i32) {
    %c0_i32 = arith.constant 0 : i32
    %c0_i32_0 = arith.constant 0 : i32
    %c0_i32_1 = arith.constant 0 : i32
    return %c0_i32, %c0_i32_0 : i32, i32
  }
  func.func @transform_6(%arg0: i32) -> (i32, i32) {
    %c0_i32 = arith.constant 0 : i32
    %c0_i32_0 = arith.constant 0 : i32
    %c0_i32_1 = arith.constant 0 : i32
    return %c0_i32, %c0_i32_0 : i32, i32
  }
  func.func @transform_7(%arg0: i32) -> (i32, i32) {
    %c0_i32 = arith.constant 0 : i32
    %c0_i32_0 = arith.constant 0 : i32
    %c0_i32_1 = arith.constant 0 : i32
    return %c0_i32, %c0_i32_0 : i32, i32
  }
  func.func @transform_8(%arg0: i32) -> (i32, i32) {
    %c0_i32 = arith.constant 0 : i32
    %c0_i32_0 = arith.constant 0 : i32
    %c0_i32_1 = arith.constant 0 : i32
    return %c0_i32, %c0_i32_0 : i32, i32
  }
  func.func @transform_9(%arg0: i32) -> (i32, i32) {
    %c0_i32 = arith.constant 0 : i32
    %c0_i32_0 = arith.constant 0 : i32
    return %arg0, %c0_i32 : i32, i32
  }
}

</mosaic_0001>

<bundles_post_ra>
// kernel: tpu_custom_call.1
= control target key start
LH: loop header
LB: loop body
LE: loop exit
PB: predicated region body
PF: predicated region fallthrough
CT: control target
= control target key end

     0   :  { %14 = vsyncpa [#allocation3], 0  ;;  %s1201_s0 = inlined_call_operand.hbm [shape: f32[8,128], index: 0, kind: input, shape index: {}]   ;;  %s1202_s1 = inlined_call_operand.hbm [shape: f32[128,128], index: 1, kind: input, shape index: {}]   ;;  %s1203_s2 = inlined_call_operand.hbm [shape: f32[8,128], index: 2, kind: input, shape index: {}]   ;;  %s1204_s3 = inlined_call_operand.hbm [shape: f32[128,128], index: 3, kind: input, shape index: {}]   ;;  %s1205_s4 = inlined_call_operand.vmem [shape: f32[8,128], index: 4, kind: input, shape index: {}]   ;;  %s1206_s5 = inlined_call_operand.hbm [shape: f32[128,128], index: 5, kind: input, shape index: {}]   ;;  %s1207_s6 = inlined_call_operand.vmem [shape: f32[8,128], index: 6, kind: input, shape index: {}]   ;;  %s1208_s7 = inlined_call_operand.hbm [shape: f32[128,128], index: 7, kind: input, shape index: {}]   ;;  %s1209_s8 = inlined_call_operand.vmem [shape: f32[8,128], index: 8, kind: input, shape index: {}]   ;;  %s1210_s9 = inlined_call_operand.hbm [shape: f32[8,128], index: 9, kind: output, shape index: {}]  }
   0x1   :  { %15 = vsyncpa [#allocation6], 0 }
   0x2   :  { %16 = vsyncpa [#allocation9], 0 }
   0x3   :  { %17 = vsyncpa [#allocation12], 0 }
   0x4   :  { %18 = vsyncpa [#allocation4], 0  ;;  %s994_s30 = smov [#allocation5]   ;;  %s830_s13 = scalar_lea.hbm %s1202_s1, 2048 }
   0x5   :  { %s34_s10 = sshll.u32 %s994_s30, 4  ;;  %p831_p0 = scmp.ne.s32.totalorder %s1202_s1, %s830_s13  ;;  %s35_s10 = int_to_ptr.vmem [resolvable:$true] %s34_s10 }
   0x6   :  { %p834_p1 = scmp.lt.u32.totalorder %s830_s13, %s1202_s1 }
   0x8   :  { %p836_p2 = pnand %p834_p1, %p831_p0 }
   0xa   :  { %839 = shalt.err (!%p836_p2)
}
   0xb   :  { %s840_s18 = scalar_lea.vmem %s35_s10, 2048  ;;  %p845_p4 = scmp.lt.s32.totalorder %s35_s10, %s35_s10 }
   0xc   :  { %p841_p3 = scmp.ne.s32.totalorder %s35_s10, %s840_s18  ;;  %p846_p5 = scmp.lt.s32.totalorder %s840_s18, %s840_s18 }
   0xe   :  { %p847_p6 = por %p846_p5, %p845_p4 }
  0x10   :  { %p848_p7 = pnand %p847_p6, %p841_p3 }
  0x12   :  { %851 = shalt.err (!%p848_p7)
}
  0x13   :  { %s995_s19 = smov 128   ;;  %s996_s20 = smov 8  }
  0x14   :  { %40 = dma.hbm_to_vmem [thread:$0]  %s1202_s1, 2048, %s35_s10, [#allocation6], %s995_s19, %s995_s19, %s996_s20  }
  0x15   :  { %s997_s23 = smov [#allocation8]   ;;  %s998_s25 = smov [#allocation2]  }
  0x16   :  { %s56_s24 = sshll.u32 %s997_s23, 4  ;;  %s25_s26 = sshll.u32 %s998_s25, 4  ;;  %s57_s24 = int_to_ptr.vmem [resolvable:$true] %s56_s24  ;;  %s26_s26 = int_to_ptr.vmem [resolvable:$true] %s25_s26 }
  0x17   :  { %s852_s29 = scalar_lea.hbm %s1204_s3, 2048 }
  0x18   :  { %p853_p8 = scmp.ne.s32.totalorder %s1204_s3, %s852_s29  ;;  %p856_p9 = scmp.lt.u32.totalorder %s852_s29, %s1204_s3 }
  0x1a   :  { %p858_p10 = pnand %p856_p9, %p853_p8 }
  0x1c   :  { %861 = shalt.err (!%p858_p10)
}
  0x1d   :  { %s862_s1 = scalar_lea.vmem %s57_s24, 2048  ;;  %p867_p12 = scmp.lt.s32.totalorder %s57_s24, %s57_s24 }
  0x1e   :  { %p863_p11 = scmp.ne.s32.totalorder %s57_s24, %s862_s1  ;;  %p868_p13 = scmp.lt.s32.totalorder %s862_s1, %s862_s1 }
  0x20   :  { %p869_p0 = por %p868_p13, %p867_p12 }
  0x22   :  { %p870_p1 = pnand %p869_p0, %p863_p11 }
  0x24   :  { %873 = shalt.err (!%p870_p1)
}
  0x25   :  { %62 = dma.hbm_to_vmem [thread:$0]  %s1204_s3, 2048, %s57_s24, [#allocation9], %s995_s19, %s995_s19, %s996_s20  }
  0x26   :  { %s874_s17 = scalar_lea.hbm %s1201_s0, 128 }
  0x27   :  { %p875_p2 = scmp.ne.s32.totalorder %s1201_s0, %s874_s17  ;;  %p878_p3 = scmp.lt.u32.totalorder %s874_s17, %s1201_s0 }
  0x29   :  { %p880_p4 = pnand %p878_p3, %p875_p2 }
  0x2b   :  { %883 = shalt.err (!%p880_p4)
}
  0x2c   :  { %s884_s25 = scalar_lea.vmem %s26_s26, 128  ;;  %p889_p6 = scmp.lt.s32.totalorder %s26_s26, %s26_s26 }
  0x2d   :  { %p885_p5 = scmp.ne.s32.totalorder %s26_s26, %s884_s25  ;;  %p890_p7 = scmp.lt.s32.totalorder %s884_s25, %s884_s25 }
  0x2f   :  { %p891_p8 = por %p890_p7, %p889_p6 }
  0x31   :  { %p892_p9 = pnand %p891_p8, %p885_p5 }
  0x33   :  { %895 = shalt.err (!%p892_p9)
}
  0x34   :  { %28 = dma.hbm_to_vmem [thread:$0]  %s1201_s0, 128, %s26_s26, [#allocation3]  }
  0x35   :  { %s999_s27 = smov [#allocation7]   ;;  %s1000_s29 = smov [#allocation10]  }
  0x36   :  { %s47_s28 = sshll.u32 %s999_s27, 4  ;;  %s70_s30 = sshll.u32 %s1000_s29, 4  ;;  %s48_s28 = int_to_ptr.vmem [resolvable:$true] %s47_s28  ;;  %s71_s30 = int_to_ptr.vmem [resolvable:$true] %s70_s30 }
  0x37   :  { %s896_s13 = scalar_lea.hbm %s1203_s2, 128 }
  0x38   :  { %p897_p10 = scmp.ne.s32.totalorder %s1203_s2, %s896_s13  ;;  %p900_p11 = scmp.lt.u32.totalorder %s896_s13, %s1203_s2 }
  0x3a   :  { %p902_p12 = pnand %p900_p11, %p897_p10 }
  0x3c   :  { %905 = shalt.err (!%p902_p12)
}
  0x3d   :  { %s906_s0 = scalar_lea.vmem %s48_s28, 128  ;;  %p911_p0 = scmp.lt.s32.totalorder %s48_s28, %s48_s28 }
  0x3e   :  { %p907_p13 = scmp.ne.s32.totalorder %s48_s28, %s906_s0  ;;  %p912_p1 = scmp.lt.s32.totalorder %s906_s0, %s906_s0 }
  0x40   :  { %p913_p2 = por %p912_p1, %p911_p0 }
  0x42   :  { %p914_p3 = pnand %p913_p2, %p907_p13 }
  0x44   :  { %917 = shalt.err (!%p914_p3)
}
  0x45   :  { %50 = dma.hbm_to_vmem [thread:$0]  %s1203_s2, 128, %s48_s28, [#allocation6]  }
  0x46   :  { %s918_s21 = scalar_lea.hbm %s1206_s5, 2048 }
  0x47   :  { %p919_p4 = scmp.ne.s32.totalorder %s1206_s5, %s918_s21  ;;  %p922_p5 = scmp.lt.u32.totalorder %s918_s21, %s1206_s5 }
  0x49   :  { %p924_p6 = pnand %p922_p5, %p919_p4 }
  0x4b   :  { %927 = shalt.err (!%p924_p6)
}
  0x4c   :  { %s928_s24 = scalar_lea.vmem %s71_s30, 2048  ;;  %p933_p8 = scmp.lt.s32.totalorder %s71_s30, %s71_s30 }
  0x4d   :  { %p929_p7 = scmp.ne.s32.totalorder %s71_s30, %s928_s24  ;;  %p934_p9 = scmp.lt.s32.totalorder %s928_s24, %s928_s24 }
  0x4f   :  { %p935_p10 = por %p934_p9, %p933_p8 }
  0x51   :  { %p936_p11 = pnand %p935_p10, %p929_p7 }
  0x53   :  { %939 = shalt.err (!%p936_p11)
}
  0x54   :  { %76 = dma.hbm_to_vmem [thread:$0]  %s1206_s5, 2048, %s71_s30, [#allocation9], %s995_s19, %s995_s19, %s996_s20  }
  0x55   :  { %s1001_s28 = smov [#allocation11]   ;;  %s940_s13 = scalar_lea.hbm %s1208_s7, 2048 }
  0x56   :  { %s84_s29 = sshll.u32 %s1001_s28, 4  ;;  %p941_p12 = scmp.ne.s32.totalorder %s1208_s7, %s940_s13  ;;  %s85_s29 = int_to_ptr.vmem [resolvable:$true] %s84_s29 }
  0x57   :  { %p944_p13 = scmp.lt.u32.totalorder %s940_s13, %s1208_s7 }
  0x59   :  { %p946_p0 = pnand %p944_p13, %p941_p12 }
  0x5b   :  { %949 = shalt.err (!%p946_p0)
}
  0x5c   :  { %s950_s0 = scalar_lea.vmem %s85_s29, 2048  ;;  %p955_p2 = scmp.lt.s32.totalorder %s85_s29, %s85_s29 }
  0x5d   :  { %p951_p1 = scmp.ne.s32.totalorder %s85_s29, %s950_s0  ;;  %p956_p3 = scmp.lt.s32.totalorder %s950_s0, %s950_s0 }
  0x5f   :  { %p957_p4 = por %p956_p3, %p955_p2 }
  0x61   :  { %p958_p5 = pnand %p957_p4, %p951_p1 }
  0x63   :  { %961 = shalt.err (!%p958_p5)
}
  0x64   :  { %90 = dma.hbm_to_vmem [thread:$0]  %s1208_s7, 2048, %s85_s29, [#allocation12], %s995_s19, %s995_s19, %s996_s20  }
  0x65   :  { %984 = dma.done.wait [#allocation3], 128  }
  0x66   :  { %985 = vsyncadd [#allocation3], 4294967168 }
  0x67   :  { %986 = dma.done.wait [#allocation6], 2176  }
  0x68   :  { %987 = vsyncadd [#allocation6], 4294965120 }
  0x69   :  { %988 = dma.done.wait [#allocation9], 4096  }
  0x6a   :  { %989 = vsyncadd [#allocation9], 4294963200 }
  0x6b   :  { %990 = dma.done.wait [#allocation12], 2048  }
  0x6c   :  { %991 = vsyncadd [#allocation12], 4294965248  ;;  %v1002_v0 = vmov 0.0|0.0   ;;  %vm1003_vm0 = vmmov 0   ;;  %v1004_v1 = vmov 0.0   ;;  %v112_v2 = vld [vmem:[#allocation5] sm:$0xff] }
  0x6d   :  { %716 = vmatprep.subr.bf16.mxu0 %v1002_v0  ;;  %608 = vmatprep.mubr.msk.f32.mxu0 %vm1003_vm0, %v1004_v1  ;;  %v113_v3 = vld [vmem:[#allocation5 + $0x8] sm:$0xff]  ;;  %v114_v4 = vld [vmem:[#allocation5 + $0x10] sm:$0xff]  ;;  %v115_v6 = vld [vmem:[#allocation5 + $0x18] sm:$0xff]  ;;  %s1005_s17 = smov [#allocation13]  }
  0x6e   :  { %740 = vmatprep.subr.bf16.mxu1 %v1002_v0  ;;  %643 = vmatprep.mubr.msk.f32.mxu1 %vm1003_vm0, %v1004_v1  ;;  %v717_v5 = vpack.c.bf16 %v113_v3, %v112_v2  ;;  %v720_v7 = vpack.c.bf16 %v115_v6, %v114_v4  ;;  %v116_v8 = vld [vmem:[#allocation5 + $0x20] sm:$0xff]  ;;  %v117_v9 = vld [vmem:[#allocation5 + $0x28] sm:$0xff]  ;;  %v205_v11 = vld [vmem:[#allocation8 + $0x8] sm:$0xff]  ;;  %s491_s18 = sshll.u32 %s1005_s17, 4  ;;  %s492_s18 = int_to_ptr.vmem [resolvable:$true] %s491_s18 }
  0x6f   :  { %v204_v10 = vld [vmem:[#allocation8] sm:$0xff]  ;;  %v206_v12 = vld [vmem:[#allocation8 + $0x10] sm:$0xff]  ;;  %v207_v13 = vld [vmem:[#allocation8 + $0x18] sm:$0xff]  ;;  %v723_v14 = vpack.c.bf16 %v117_v9, %v116_v8  ;;  %p967_p7 = scmp.lt.s32.totalorder %s492_s18, %s492_s18 }
  0x70   :  { %718 = vmatpush3.bf16.msra.mxu0 %v717_v5  ;;  %v741_v15 = vpack.c.bf16 %v205_v11, %v204_v10  ;;  %v118_v16 = vld [vmem:[#allocation5 + $0x30] sm:$0xff]  ;;  %v119_v17 = vld [vmem:[#allocation5 + $0x38] sm:$0xff]  ;;  %v744_v18 = vpack.c.bf16 %v207_v13, %v206_v12  ;;  %v208_v19 = vld [vmem:[#allocation8 + $0x20] sm:$0xff] }
  0x71   :  { %719 = vmatprep.subr.bf16.mxu0 %v1002_v0  ;;  %v209_v20 = vld [vmem:[#allocation8 + $0x28] sm:$0xff]  ;;  %v726_v21 = vpack.c.bf16 %v119_v17, %v118_v16  ;;  %v120_v22 = vld [vmem:[#allocation5 + $0x40] sm:$0xff]  ;;  %v121_v23 = vld [vmem:[#allocation5 + $0x48] sm:$0xff] }
  0x72   :  { %742 = vmatpush3.bf16.msra.mxu1 %v741_v15  ;;  %v747_v24 = vpack.c.bf16 %v209_v20, %v208_v19  ;;  %v210_v25 = vld [vmem:[#allocation8 + $0x30] sm:$0xff]  ;;  %v211_v26 = vld [vmem:[#allocation8 + $0x38] sm:$0xff]  ;;  %v729_v27 = vpack.c.bf16 %v121_v23, %v120_v22  ;;  %v122_v28 = vld [vmem:[#allocation5 + $0x50] sm:$0xff] }
  0x73   :  { %743 = vmatprep.subr.bf16.mxu1 %v1002_v0  ;;  %v123_v29 = vld [vmem:[#allocation5 + $0x58] sm:$0xff]  ;;  %v750_v30 = vpack.c.bf16 %v211_v26, %v210_v25  ;;  %v212_v31 = vld [vmem:[#allocation8 + $0x40] sm:$0xff]  ;;  %v213_v32 = vld [vmem:[#allocation8 + $0x48] sm:$0xff] }
  0x74   :  { %721 = vmatpush3.bf16.msra.mxu0 %v720_v7  ;;  %v732_v33 = vpack.c.bf16 %v123_v29, %v122_v28  ;;  %v124_v34 = vld [vmem:[#allocation5 + $0x60] sm:$0xff]  ;;  %v125_v35 = vld [vmem:[#allocation5 + $0x68] sm:$0xff]  ;;  %v753_v36 = vpack.c.bf16 %v213_v32, %v212_v31  ;;  %v126_v38 = vld [vmem:[#allocation5 + $0x70] sm:$0xff] }
  0x75   :  { %722 = vmatprep.subr.bf16.mxu0 %v1002_v0  ;;  %v735_v37 = vpack.c.bf16 %v125_v35, %v124_v34  ;;  %v127_v39 = vld [vmem:[#allocation5 + $0x78] sm:$0xff]  ;;  %v215_v43 = vld [vmem:[#allocation8 + $0x58] sm:$0xff]  ;;  %v216_v45 = vld [vmem:[#allocation8 + $0x60] sm:$0xff] }
  0x76   :  { %745 = vmatpush3.bf16.msra.mxu1 %v744_v18  ;;  %v738_v40 = vpack.c.bf16 %v127_v39, %v126_v38  ;;  %v111_v41 = vld [vmem:[#allocation2] sm:$0xff]  ;;  %v217_v46 = vld [vmem:[#allocation8 + $0x68] sm:$0xff]  ;;  %v219_v49 = vld [vmem:[#allocation8 + $0x78] sm:$0xff] }
  0x77   :  { %746 = vmatprep.subr.bf16.mxu1 %v1002_v0  ;;  %v214_v42 = vld [vmem:[#allocation8 + $0x50] sm:$0xff]  ;;  %v759_v47 = vpack.c.bf16 %v217_v46, %v216_v45  ;;  %v296_v51 = vld [vmem:[#allocation10] sm:$0xff]  ;;  %v297_v52 = vld [vmem:[#allocation10 + $0x8] sm:$0xff] }
  0x78   :  { %724 = vmatpush3.bf16.msra.mxu0 %v723_v14  ;;  %v756_v44 = vpack.c.bf16 %v215_v43, %v214_v42  ;;  %v218_v48 = vld [vmem:[#allocation8 + $0x70] sm:$0xff]  ;;  %v765_v54 = vpack.c.bf16 %v297_v52, %v296_v51  ;;  %v299_v55 = vld [vmem:[#allocation10 + $0x18] sm:$0xff]  ;;  %v300_v57 = vld [vmem:[#allocation10 + $0x20] sm:$0xff] }
  0x79   :  { %725 = vmatprep.subr.bf16.mxu0 %v1002_v0  ;;  %v762_v50 = vpack.c.bf16 %v219_v49, %v218_v48  ;;  %v298_v53 = vld [vmem:[#allocation10 + $0x10] sm:$0xff]  ;;  %v301_v58 = vld [vmem:[#allocation10 + $0x28] sm:$0xff]  ;;  %v303_v61 = vld [vmem:[#allocation10 + $0x38] sm:$0xff] }
  0x7a   :  { %748 = vmatpush3.bf16.msra.mxu1 %v747_v24  ;;  %v768_v56 = vpack.c.bf16 %v299_v55, %v298_v53  ;;  %v771_v59 = vpack.c.bf16 %v301_v58, %v300_v57  ;;  %v302_v60 = vld [vmem:[#allocation10 + $0x30] sm:$0xff]  ;;  %v304_v63 = vld [vmem:[#allocation10 + $0x40] sm:$0xff]  ;;  %v305_v2 = vld [vmem:[#allocation10 + $0x48] sm:$0xff] }
  0x7b   :  { %749 = vmatprep.subr.bf16.mxu1 %v1002_v0  ;;  %v774_v62 = vpack.c.bf16 %v303_v61, %v302_v60  ;;  %v777_v3 = vpack.c.bf16 %v305_v2, %v304_v63  ;;  %v306_v4 = vld [vmem:[#allocation10 + $0x50] sm:$0xff]  ;;  %v307_v5 = vld [vmem:[#allocation10 + $0x58] sm:$0xff]  ;;  %v308_v7 = vld [vmem:[#allocation10 + $0x60] sm:$0xff] }
  0x7c   :  { %727 = vmatpush3.bf16.msra.mxu0 %v726_v21  ;;  %v780_v6 = vpack.c.bf16 %v307_v5, %v306_v4  ;;  %v309_v8 = vld [vmem:[#allocation10 + $0x68] sm:$0xff]  ;;  %v503_v10 = vld [vmem:[#allocation7] ss:$0 sm:$0xff]  ;;  %v310_v15 = vld [vmem:[#allocation10 + $0x70] sm:$0xff] }
  0x7d   :  { %728 = vmatprep.subr.bf16.mxu0 %v1002_v0  ;;  %v783_v9 = vpack.c.bf16 %v309_v8, %v308_v7  ;;  %v311_v16 = vld [vmem:[#allocation10 + $0x78] sm:$0xff]  ;;  %v393_v18 = vld [vmem:[#allocation11] sm:$0xff]  ;;  %v394_v19 = vld [vmem:[#allocation11 + $0x8] sm:$0xff] }
  0x7e   :  { %751 = vmatpush3.bf16.msra.mxu1 %v750_v30  ;;  %v786_v17 = vpack.c.bf16 %v311_v16, %v310_v15  ;;  %v789_v20 = vpack.c.bf16 %v394_v19, %v393_v18  ;;  %v504_v21 = vld [vmem:[%s1205_s4] ss:$0 sm:$0xff]  ;;  %v396_v26 = vld [vmem:[#allocation11 + $0x18] sm:$0xff]  ;;  %v397_v28 = vld [vmem:[#allocation11 + $0x20] sm:$0xff] }
  0x7f   :  { %752 = vmatprep.subr.bf16.mxu1 %v1002_v0  ;;  %v398_v29 = vld [vmem:[#allocation11 + $0x28] sm:$0xff]  ;;  %v399_v31 = vld [vmem:[#allocation11 + $0x30] sm:$0xff]  ;;  %v400_v32 = vld [vmem:[#allocation11 + $0x38] sm:$0xff] }
  0x80   :  { %730 = vmatpush3.bf16.msra.mxu0 %v729_v27  ;;  %v795_v30 = vpack.c.bf16 %v398_v29, %v397_v28  ;;  %v401_v34 = vld [vmem:[#allocation11 + $0x40] sm:$0xff]  ;;  %v402_v35 = vld [vmem:[#allocation11 + $0x48] sm:$0xff]  ;;  %v404_v38 = vld [vmem:[#allocation11 + $0x58] sm:$0xff] }
  0x81   :  { %731 = vmatprep.subr.bf16.mxu0 %v1002_v0  ;;  %v407_v43 = vld [vmem:[#allocation11 + $0x70] sm:$0xff] }
  0x82   :  { %754 = vmatpush3.bf16.msra.mxu1 %v753_v36  ;;  %v801_v36 = vpack.c.bf16 %v402_v35, %v401_v34  ;;  %v505_v46 = vld [vmem:[%s1207_s6] ss:$0 sm:$0xff]  ;;  %s962_s6 = scalar_lea.vmem %s492_s18, 128 }
  0x83   :  { %755 = vmatprep.subr.bf16.mxu1 %v1002_v0  ;;  %p963_p6 = scmp.ne.s32.totalorder %s492_s18, %s962_s6  ;;  %p968_p8 = scmp.lt.s32.totalorder %s962_s6, %s962_s6 }
  0x84   :  { %733 = vmatpush3.bf16.msra.mxu0 %v732_v33  ;;  %v798_v33 = vpack.c.bf16 %v400_v32, %v399_v31 }
  0x85   :  { %734 = vmatprep.subr.bf16.mxu0 %v1002_v0  ;;  %p969_p9 = por %p968_p8, %p967_p7 }
  0x86   :  { %757 = vmatpush3.bf16.msra.mxu1 %v756_v44  ;;  %v408_v44 = vld [vmem:[#allocation11 + $0x78] sm:$0xff] }
  0x87   :  { %758 = vmatprep.subr.bf16.mxu1 %v1002_v0  ;;  %v810_v45 = vpack.c.bf16 %v408_v44, %v407_v43  ;;  %p970_p10 = pnand %p969_p9, %p963_p6 }
  0x88   :  { %736 = vmatpush3.bf16.msra.mxu0 %v735_v37  ;;  %v403_v37 = vld [vmem:[#allocation11 + $0x50] sm:$0xff] }
  0x89   :  { %737 = vmatprep.subr.bf16.mxu0 %v1002_v0  ;;  %v804_v39 = vpack.c.bf16 %v404_v38, %v403_v37 }
  0x8a   :  { %760 = vmatpush3.bf16.msra.mxu1 %v759_v47 }
  0x8b   :  { %761 = vmatprep.subr.bf16.mxu1 %v1002_v0 }
  0x8c   :  { %739 = vmatpush3.bf16.msra.mxu0 %v738_v40  ;;  %v405_v40 = vld [vmem:[#allocation11 + $0x60] sm:$0xff] }
  0x8d   :  { %764 = vmatprep.subr.bf16.mxu0 %v1002_v0 }
  0x8e   :  { %763 = vmatpush3.bf16.msra.mxu1 %v762_v50 }
  0x8f   :  { %609 = vmatmul.mubr.f32.vlgmr.msra.gmra.mrb[0].mxu0 %v111_v41  ;;  %788 = vmatprep.subr.bf16.mxu1 %v1002_v0  ;;  %v406_v41 = vld [vmem:[#allocation11 + $0x68] sm:$0xff] }
  0x90   :  { %678 = vmatprep.mubr.msk.f32.mxu0 %vm1003_vm0, %v1004_v1  ;;  %766 = vmatpush3.bf16.msra.mxu0 %v765_v54  ;;  %v807_v42 = vpack.c.bf16 %v406_v41, %v405_v40  ;;  %v507_v54 = vld [vmem:[%s1209_s8] ss:$0 sm:$0xff] }
  0x91   :  { %767 = vmatprep.subr.bf16.mxu0 %v1002_v0 }
  0x94   :  { %769 = vmatpush3.bf16.msra.mxu0 %v768_v56 }
  0x95   :  { %770 = vmatprep.subr.bf16.mxu0 %v1002_v0 }
  0x98   :  { %772 = vmatpush3.bf16.msra.mxu0 %v771_v59 }
  0x99   :  { %773 = vmatprep.subr.bf16.mxu0 %v1002_v0 }
  0x9c   :  { %775 = vmatpush3.bf16.msra.mxu0 %v774_v62 }
  0x9d   :  { %776 = vmatprep.subr.bf16.mxu0 %v1002_v0 }
  0xa0   :  { %778 = vmatpush3.bf16.msra.mxu0 %v777_v3 }
  0xa1   :  { %779 = vmatprep.subr.bf16.mxu0 %v1002_v0 }
  0xa4   :  { %781 = vmatpush3.bf16.msra.mxu0 %v780_v6 }
  0xa5   :  { %782 = vmatprep.subr.bf16.mxu0 %v1002_v0 }
  0xa8   :  { %784 = vmatpush3.bf16.msra.mxu0 %v783_v9 }
  0xa9   :  { %785 = vmatprep.subr.bf16.mxu0 %v1002_v0 }
  0xac   :  { %787 = vmatpush3.bf16.msra.mxu0 %v786_v17 }
 0x162   :  { %v199_v11 = vpop.f32.mrb[0].mxu0 }
 0x163   :  { %v200_v12 = vadd.f32 %v503_v10, %v199_v11  ;;  %v610_v13 = vpop.f32.mrb[1].mxu0 }
 0x165   :  { %824 = vtanh.f32 %v200_v12 }
 0x16f   :  { %v825_v14 = vpop.eup %824 }
 0x170   :  { %644 = vmatmul.mubr.f32.vlgmr.msra.gmra.mrb[0].mxu1 %v825_v14 }
 0x171   :  { %713 = vmatprep.mubr.msk.f32.mxu1 %vm1003_vm0, %v1004_v1  ;;  %790 = vmatpush3.bf16.msra.mxu1 %v789_v20  ;;  %v395_v1 = vld [vmem:[#allocation11 + $0x10] sm:$0xff] }
 0x172   :  { %791 = vmatprep.subr.bf16.mxu1 %v1002_v0  ;;  %v792_v27 = vpack.c.bf16 %v396_v26, %v395_v1 }
 0x175   :  { %793 = vmatpush3.bf16.msra.mxu1 %v792_v27 }
 0x176   :  { %794 = vmatprep.subr.bf16.mxu1 %v1002_v0 }
 0x179   :  { %796 = vmatpush3.bf16.msra.mxu1 %v795_v30 }
 0x17a   :  { %797 = vmatprep.subr.bf16.mxu1 %v1002_v0 }
 0x17d   :  { %799 = vmatpush3.bf16.msra.mxu1 %v798_v33 }
 0x17e   :  { %800 = vmatprep.subr.bf16.mxu1 %v1002_v0 }
 0x181   :  { %802 = vmatpush3.bf16.msra.mxu1 %v801_v36 }
 0x182   :  { %803 = vmatprep.subr.bf16.mxu1 %v1002_v0 }
 0x185   :  { %805 = vmatpush3.bf16.msra.mxu1 %v804_v39 }
 0x186   :  { %806 = vmatprep.subr.bf16.mxu1 %v1002_v0 }
 0x189   :  { %808 = vmatpush3.bf16.msra.mxu1 %v807_v42 }
 0x18a   :  { %809 = vmatprep.subr.bf16.mxu1 %v1002_v0 }
 0x18d   :  { %811 = vmatpush3.bf16.msra.mxu1 %v810_v45 }
 0x243   :  { %v291_v22 = vpop.f32.mrb[0].mxu1 }
 0x244   :  { %v292_v23 = vadd.f32 %v504_v21, %v291_v22  ;;  %v645_v24 = vpop.f32.mrb[1].mxu1 }
 0x246   :  { %v295_v25 = vmax.f32 %v292_v23, 0.0 }
 0x248   :  { %679 = vmatmul.mubr.f32.vlgmr.msra.gmra.mrb[2].mxu0 %v295_v25 }
 0x31b   :  { %v383_v47 = vpop.f32.mrb[2].mxu0 }
 0x31c   :  { %v384_v48 = vadd.f32 %v505_v46, %v383_v47  ;;  %v680_v49 = vpop.f32.mrb[3].mxu0 }
 0x31e   :  { %v506_v50 = vmul.f32 -1.442695, %v384_v48 }
 0x320   :  { %826 = vpow2.f32 %v506_v50 }
 0x32a   :  { %v827_v51 = vpop.eup %826 }
 0x32b   :  { %v390_v52 = vadd.f32 1.0, %v827_v51 }
 0x32d   :  { %828 = vrcp.f32 %v390_v52 }
 0x337   :  { %v829_v53 = vpop.eup %828 }
 0x338   :  { %714 = vmatmul.mubr.f32.vlgmr.msra.gmra.mrb[2].mxu1 %v829_v53 }
 0x40b   :  { %v480_v0 = vpop.f32.mrb[2].mxu1 }
 0x40c   :  { %v481_v55 = vadd.f32 %v507_v54, %v480_v0  ;;  %v715_v56 = vpop.f32.mrb[3].mxu1 }
 0x40e   :  { %484 = vst [vmem:[#allocation13] sm:$0xff] %v481_v55 }
 0x40f   :  { %973 = shalt.err (!%p970_p10)
}
 0x410   :  { %s974_s23 = scalar_lea.hbm %s1210_s9, 128 }
 0x411   :  { %p975_p11 = scmp.ne.s32.totalorder %s1210_s9, %s974_s23  ;;  %p978_p12 = scmp.lt.u32.totalorder %s974_s23, %s1210_s9 }
 0x413   :  { %p980_p13 = pnand %p978_p12, %p975_p11 }
 0x415   :  { %983 = shalt.err (!%p980_p13)
}
 0x416   :  { %494 = dma.vmem_to_hbm [thread:$0]  %s492_s18, 128, %s1210_s9, [#allocation4]  }
 0x417   :  { %992 = dma.done.wait [#allocation4], 128  }
 0x418   :  { %993 = vsyncadd [#allocation4], 4294967168 }
 0x419   :  { %498 = vsyncpa [#allocation3], 1 }
 0x41a   :  { %499 = vsyncpa [#allocation6], 1 }
 0x41b   :  { %500 = vsyncpa [#allocation9], 1 }
 0x41c   :  { %501 = vsyncpa [#allocation12], 1 }
 0x41d   :  { %502 = vsyncpa [#allocation4], 1 }

</bundles_post_ra>
